<compile_context>
chip_gen: v6e
topology: v6e:2x2x1
jax: 0.10.0
libtpu: 0.0.40
codegen_flags: <defaults>
</compile_context>

<pallas_src>
import functools
import math

import numpy as np
import jax
import jax.numpy as jnp
from jax.experimental import pallas as pl
from jax.experimental.pallas import tpu as pltpu

# ---- SpeechBrain Fbank defaults ----
SAMPLE_RATE = 16000
N_FFT = 400
N_MELS = 40
F_MIN = 0.0
F_MAX = SAMPLE_RATE / 2.0
WIN_LENGTH = int(round(SAMPLE_RATE / 1000.0 * 25))   # 400 samples
HOP = int(round(SAMPLE_RATE / 1000.0 * 10))          # 160 samples
N_STFT = N_FFT // 2 + 1                              # 201 bins
TOP_DB = 80.0
AMIN = 1e-10
MULTIPLIER = 10.0                                    # power_spectrogram == 2
DB_MULTIPLIER = math.log10(max(AMIN, 1.0))           # = 0.0 (ref_value = 1.0)

# ---- MXU / lane friendly padded sizes ----
NSTFT_PAD = 256          # 201 -> 256 frequency bins (zero padded, lane aligned)
DFT_W = 2 * NSTFT_PAD    # DFT RHS width: [re | im] = 512
K_FRAME = 3 * HOP        # 480-sample frame slab (400 real + 80 zero-weighted)
N_MELS_PAD = 128         # 40 -> 128 mel columns (lane-dense output)
ROW_ALIGN = 16           # tile_f granularity (bf16 sublane packing)
MASK_VAL = -1e30         # "minus infinity" for the masked per-tile max


def _round_up(x, m):
    return ((x + m - 1) // m) * m


# ---------------- constant-matrix construction (host-side glue) --------------
def _hamming_window(n):
    # torch.hamming_window default: periodic=True, alpha=0.54, beta=0.46
    k = np.arange(n, dtype=np.float64)
    return 0.54 - 0.46 * np.cos(2.0 * np.pi * k / n)


def _window_nfft():
    # torch.stft centers a short window inside n_fft (here WIN_LENGTH == N_FFT).
    w = _hamming_window(WIN_LENGTH)
    if WIN_LENGTH < N_FFT:
        lpad = (N_FFT - WIN_LENGTH) // 2
        w = np.pad(w, (lpad, N_FFT - WIN_LENGTH - lpad))
    return w                                               # (N_FFT,)


def _dft_cos_sin():
    # one-sided real DFT: X_re = x @ cos, X_im = x @ (-sin)
    n = np.arange(N_FFT, dtype=np.float64)[:, None]
    k = np.arange(N_STFT, dtype=np.float64)[None, :]
    ang = 2.0 * np.pi * n * k / N_FFT
    return np.cos(ang), -np.sin(ang)                        # (N_FFT, N_STFT)


def _mel_fbank_matrix():
    # SpeechBrain Filterbank, filter_shape='triangular', freeze=True
    def to_mel(hz):
        return 2595.0 * np.log10(1.0 + hz / 700.0)

    def to_hz(mel):
        return 700.0 * (10.0 ** (mel / 2595.0) - 1.0)

    mel = np.linspace(to_mel(F_MIN), to_mel(F_MAX), N_MELS + 2)
    hz = to_hz(mel)
    band = (hz[1:] - hz[:-1])[:-1]                          # (n_mels,)
    f_central = hz[1:-1]                                    # (n_mels,)
    all_freqs = np.linspace(0.0, SAMPLE_RATE // 2, N_STFT)  # (n_stft,)
    slope = (all_freqs[None, :] - f_central[:, None]) / band[:, None]
    fb = np.maximum(0.0, np.minimum(slope + 1.0, -slope + 1.0)).T
    return fb                                               # (n_stft, n_mels)


def _kernel_constants():
    """Windowed, fused, zero-padded DFT matrix and padded mel matrix (bf16).

    W: (K_FRAME=480, DFT_W=512).  Rows 0..399 carry the hamming-windowed
    one-sided DFT (cols [0:201] = cos, cols [256:457] = -sin); rows 400..479
    are zero so the next-frame samples riding along in the frame slab
    contribute nothing.  K pads 480 -> 512 on the MXU (2x2 weight tiles on
    v6e/v7x, 4x4 on v5e) — no partial K tiles, ~6% zero padding.
    """
    win = _window_nfft()[:, None]                           # (400, 1)
    cos_m, sin_m = _dft_cos_sin()

    w = np.zeros((K_FRAME, DFT_W), dtype=np.float64)
    w[:N_FFT, :N_STFT] = win * cos_m
    w[:N_FFT, NSTFT_PAD:NSTFT_PAD + N_STFT] = win * sin_m

    melp = np.zeros((NSTFT_PAD, N_MELS_PAD), dtype=np.float64)
    melp[:N_STFT, :N_MELS] = _mel_fbank_matrix()

    w = jnp.asarray(w.astype(np.float32)).astype(jnp.bfloat16)
    melp = jnp.asarray(melp.astype(np.float32)).astype(jnp.bfloat16)
    return w, melp


# ---------------- Pallas kernel ----------------
def _fbank_kernel(frames_ref, w_ref, mel_ref, out_ref, mx_ref, *, tile_f, n_frames):
    # frames_ref: (1, tile_f, 480) bf16  rows = [chunk_f | chunk_{f+1} | chunk_{f+2}]
    # w_ref:      (480, 512)       bf16  windowed one-sided DFT, [re | im] columns
    # mel_ref:    (256, 128)       bf16  padded triangular mel filterbank
    # out_ref:    (1, tile_f, 128) f32   log-mel features (before top_db clamp)
    # mx_ref:     (1, 1, 8, 128)   f32   per-tile max over the valid dB region
    j = pl.program_id(1)

    # Whole STFT of the tile as one dense MXU pass (K=480 pads to 512).
    x = frames_ref[0]                                        # (tile_f, 480) bf16
    y = jnp.dot(x, w_ref[...], preferred_element_type=jnp.float32)  # (tile_f, 512)

    re = y[:, :NSTFT_PAD]                                    # lane-block aligned slices
    im = y[:, NSTFT_PAD:]
    power = re * re + im * im                                # |X|^2, f32

    # Mel projection (bf16 LHS; <15% of MXU work).  Keep LHS f32 if tighter
    # parity with the f32 reference is ever required.
    fb = jnp.dot(power.astype(jnp.bfloat16), mel_ref[...],
                 preferred_element_type=jnp.float32)         # (tile_f, 128)

    # amplitude_to_DB without the per-sequence clamp (applied in the wrapper).
    x_db = (MULTIPLIER * jnp.log10(jnp.maximum(fb, AMIN))
            - MULTIPLIER * DB_MULTIPLIER)
    out_ref[0] = x_db

    # Per-tile max over the *valid* frames / mel columns only, so padded
    # frames (zero chunks) and padded mel columns never enter the top_db max.
    row = jax.lax.broadcasted_iota(jnp.int32, (tile_f, N_MELS_PAD), 0)
    col = jax.lax.broadcasted_iota(jnp.int32, (tile_f, N_MELS_PAD), 1)
    valid = (row < (n_frames - j * tile_f)) & (col < N_MELS)
    tile_max = jnp.max(jnp.where(valid, x_db, jnp.float32(MASK_VAL)),
                       axis=0, keepdims=True)                # (1, 128)
    mx_ref[0, 0] = jnp.broadcast_to(tile_max, (8, N_MELS_PAD))


# ---------------- wrapper ----------------
def fbank(wav, *, tile_f=None):
    """wav: (B, T) float32 -> (B, n_frames, n_mels) float32 log-mel features."""
    wav = wav.astype(jnp.float32)
    B, T = wav.shape
    n_frames = 1 + T // HOP

    # Frame-tile size: multiple of 16; big (<=1024) to amortize per-grid-step
    # overhead, shrunk for short clips.  For B == 1 keep >= 2 tiles so v7x's
    # two TensorCores both get a share of the parallel grid.
    cap = 1024
    if tile_f is None:
        if B == 1:
            tile_f = min(cap, _round_up(max(-(-n_frames // 2), 1), ROW_ALIGN))
        else:
            tile_f = min(cap, _round_up(n_frames, ROW_ALIGN))
    assert tile_f % ROW_ALIGN == 0
    f_pad = _round_up(n_frames, tile_f)
    n_tiles = f_pad // tile_f

    # Lane-dense bf16 frame slab: row f = [chunk_f | chunk_{f+1} | chunk_{f+2}]
    # of the center-padded waveform (hop-sized chunks of 160 samples).  Layout
    # plumbing only — the windowed DFT weights for samples 400..479 are zero.
    pad_l = N_FFT // 2
    total = (f_pad + 2) * HOP
    padded = jnp.pad(wav, ((0, 0), (pad_l, total - T - pad_l))).astype(jnp.bfloat16)
    frames = jnp.concatenate(
        [padded[:, 0:f_pad * HOP].reshape(B, f_pad, HOP),
         padded[:, HOP:(f_pad + 1) * HOP].reshape(B, f_pad, HOP),
         padded[:, 2 * HOP:(f_pad + 2) * HOP].reshape(B, f_pad, HOP)],
        axis=-1)                                             # (B, f_pad, 480) bf16

    wmat, melp = _kernel_constants()
    kernel = functools.partial(_fbank_kernel, tile_f=tile_f, n_frames=n_frames)

    out, mx = pl.pallas_call(
        kernel,
        out_shape=(
            jax.ShapeDtypeStruct((B, f_pad, N_MELS_PAD), jnp.float32),
            jax.ShapeDtypeStruct((B, n_tiles, 8, N_MELS_PAD), jnp.float32),
        ),
        grid_spec=pltpu.PrefetchScalarGridSpec(
            num_scalar_prefetch=0,
            grid=(B, n_tiles),
            in_specs=[
                # frame slab for this (batch, frame-tile)
                pl.BlockSpec((1, tile_f, K_FRAME), lambda b, j: (b, j, 0)),
                # fused windowed DFT matrix (constant, fetched once)
                pl.BlockSpec((K_FRAME, DFT_W), lambda b, j: (0, 0)),
                # padded mel filterbank (constant, fetched once)
                pl.BlockSpec((NSTFT_PAD, N_MELS_PAD), lambda b, j: (0, 0)),
            ],
            out_specs=[
                pl.BlockSpec((1, tile_f, N_MELS_PAD), lambda b, j: (b, j, 0)),
                pl.BlockSpec((1, 1, 8, N_MELS_PAD), lambda b, j: (b, j, 0, 0)),
            ],
        ),
        compiler_params=pltpu.CompilerParams(
            dimension_semantics=("parallel", "parallel"),
            vmem_limit_bytes=32 * 1024 * 1024),
    )(frames, wmat, melp)

    # Strip frame / mel padding; per-sequence top_db clamp from the tiny fused
    # per-tile maxima (no full re-read of the feature map).
    x_db = out[:, :n_frames, :N_MELS]
    db_floor = (jnp.max(mx, axis=(1, 2, 3)) - TOP_DB)[:, None, None]
    return jnp.maximum(x_db, db_floor)


# ---------------- pure-JAX f32 reference (for sanity check) ----------------
def fbank_ref(wav):
    wav = wav.astype(jnp.float32)
    B, T = wav.shape
    pad = N_FFT // 2
    padded = jnp.pad(wav, ((0, 0), (pad, pad)))
    n_frames = 1 + T // HOP
    idx = np.arange(n_frames)[:, None] * HOP + np.arange(N_FFT)[None, :]
    frames = padded[:, idx]                                  # (B, F, n_fft)
    win = jnp.asarray(_window_nfft().astype(np.float32))
    cos_m, sin_m = _dft_cos_sin()
    xw = frames * win[None, None, :]
    re = xw @ jnp.asarray(cos_m.astype(np.float32))
    im = xw @ jnp.asarray(sin_m.astype(np.float32))
    power = re * re + im * im
    fb = power @ jnp.asarray(_mel_fbank_matrix().astype(np.float32))
    x_db = MULTIPLIER * jnp.log10(jnp.maximum(fb, AMIN)) - MULTIPLIER * DB_MULTIPLIER
    db_floor = jnp.max(x_db, axis=(1, 2), keepdims=True) - TOP_DB
    return jnp.maximum(x_db, db_floor)


if __name__ == "__main__":
    key = jax.random.PRNGKey(0)
    key1, key2 = jax.random.split(key)

    # Small single-tile case: 0.1 s of 16 kHz audio -> 11 frames.
    B, T = 2, 1600
    wav = jax.random.normal(key1, (B, T), dtype=jnp.float32)
    out = jax.block_until_ready(jax.jit(fbank)(wav))

    n_frames = 1 + T // HOP
    assert out.shape == (B, n_frames, N_MELS), out.shape
    assert bool(jnp.all(jnp.isfinite(out)))

    ref = jax.block_until_ready(fbank_ref(wav))
    err = float(jnp.max(jnp.abs(out - ref)))
    # bf16 matmul pipeline: typical error ~0.03 dB, worst case well under 1 dB.
    assert err < 1.0, f"max |dB error| vs f32 reference = {err}"

    # Multi-tile case (exercises the fused per-tile max and the padded last tile).
    B2, T2 = 1, 4800                                         # 31 frames -> 2 tiles of 16
    wav2 = jax.random.normal(key2, (B2, T2), dtype=jnp.float32)
    out2 = jax.block_until_ready(jax.jit(functools.partial(fbank, tile_f=16))(wav2))
    assert out2.shape == (B2, 1 + T2 // HOP, N_MELS), out2.shape
    ref2 = jax.block_until_ready(fbank_ref(wav2))
    err2 = float(jnp.max(jnp.abs(out2 - ref2)))
    assert err2 < 1.0, f"max |dB error| (multi-tile) vs f32 reference = {err2}"

    print("KERNEL_OK")
</pallas_src>

<mosaic_0001>
module attributes {stable_mosaic.version = 11 : i64} {
  func.func @_fbank_kernel(%arg0: i32, %arg1: i32, %arg2: memref<1x16x480xbf16, #tpu.memory_space<vmem>>, %arg3: memref<480x512xbf16, #tpu.memory_space<vmem>>, %arg4: memref<256x128xbf16, #tpu.memory_space<vmem>>, %arg5: memref<1x16x128xf32, #tpu.memory_space<vmem>>, %arg6: memref<1x1x8x128xf32, #tpu.memory_space<vmem>>) attributes {dimension_semantics = [#tpu.dimension_semantics<parallel>, #tpu.dimension_semantics<parallel>], iteration_bounds = array<i64: 2, 1>, scalar_prefetch = 0 : i64, scratch_operands = 0 : i64, tpu.core_type = #tpu.core_type<tc>, window_params = [{transform_indices = @transform_0, window_bounds = array<i64: 1, 16, 480>}, {pipeline_mode = #tpu.pipeline_mode<synchronous>, transform_indices = @transform_1, window_bounds = array<i64: 480, 512>}, {pipeline_mode = #tpu.pipeline_mode<synchronous>, transform_indices = @transform_2, window_bounds = array<i64: 256, 128>}, {transform_indices = @transform_3, window_bounds = array<i64: 1, 16, 128>}, {transform_indices = @transform_4, window_bounds = array<i64: 1, 1, 8, 128>}]} {
    %c0 = arith.constant 0 : index
    %c0_0 = arith.constant 0 : index
    %c0_1 = arith.constant 0 : index
    %0 = vector.load %arg2[%c0, %c0_0, %c0_1] : memref<1x16x480xbf16, #tpu.memory_space<vmem>>, vector<1x16x480xbf16>
    %1 = vector.shape_cast %0 : vector<1x16x480xbf16> to vector<16x480xbf16>
    %c0_2 = arith.constant 0 : index
    %c0_3 = arith.constant 0 : index
    %2 = vector.load %arg3[%c0_2, %c0_3] : memref<480x512xbf16, #tpu.memory_space<vmem>>, vector<480x512xbf16>
    %cst = arith.constant dense<0.000000e+00> : vector<16x512xf32>
    %3 = tpu.matmul %1, %2, %cst {dimension_numbers = #tpu.dot_dimension_numbers<[1], [0], [0], [1], [0, 0, 1, 1], [], []>} : vector<16x480xbf16>, vector<480x512xbf16>, vector<16x512xf32> -> vector<16x512xf32>
    %4 = vector.extract_strided_slice %3 {offsets = [0, 0], sizes = [16, 256], strides = [1, 1]} : vector<16x512xf32> to vector<16x256xf32>
    %5 = vector.extract_strided_slice %3 {offsets = [0, 256], sizes = [16, 256], strides = [1, 1]} : vector<16x512xf32> to vector<16x256xf32>
    %6 = arith.mulf %4, %4 : vector<16x256xf32>
    %7 = arith.mulf %5, %5 : vector<16x256xf32>
    %8 = arith.addf %6, %7 : vector<16x256xf32>
    %9 = arith.truncf %8 : vector<16x256xf32> to vector<16x256xbf16>
    %c0_4 = arith.constant 0 : index
    %c0_5 = arith.constant 0 : index
    %10 = vector.load %arg4[%c0_4, %c0_5] : memref<256x128xbf16, #tpu.memory_space<vmem>>, vector<256x128xbf16>
    %cst_6 = arith.constant dense<0.000000e+00> : vector<16x128xf32>
    %11 = tpu.matmul %9, %10, %cst_6 {dimension_numbers = #tpu.dot_dimension_numbers<[1], [0], [0], [1], [0, 0, 1, 1], [], []>} : vector<16x256xbf16>, vector<256x128xbf16>, vector<16x128xf32> -> vector<16x128xf32>
    %cst_7 = arith.constant 1.000000e-10 : f32
    %12 = vector.broadcast %cst_7 : f32 to vector<16x128xf32>
    %13 = arith.maximumf %11, %12 : vector<16x128xf32>
    %14 = math.log %13 : vector<16x128xf32>
    %cst_8 = arith.constant 0.434294492 : f32
    %15 = vector.broadcast %cst_8 : f32 to vector<16x128xf32>
    %16 = arith.mulf %14, %15 : vector<16x128xf32>
    %cst_9 = arith.constant 1.000000e+01 : f32
    %17 = vector.broadcast %cst_9 : f32 to vector<16x128xf32>
    %18 = arith.mulf %17, %16 : vector<16x128xf32>
    %cst_10 = arith.constant 0.000000e+00 : f32
    %19 = vector.broadcast %cst_10 : f32 to vector<16x128xf32>
    %20 = arith.subf %18, %19 : vector<16x128xf32>
    %c0_11 = arith.constant 0 : index
    %c0_12 = arith.constant 0 : index
    %c0_13 = arith.constant 0 : index
    %21 = vector.load %arg5[%c0_11, %c0_12, %c0_13] : memref<1x16x128xf32, #tpu.memory_space<vmem>>, vector<1x16x128xf32>
    %22 = vector.shape_cast %21 : vector<1x16x128xf32> to vector<16x128xf32>
    %23 = vector.shape_cast %20 : vector<16x128xf32> to vector<1x16x128xf32>
    tpu.vector_store %arg5[%c0_11, %c0_12, %c0_13], %23 {strides = array<i32>} : memref<1x16x128xf32, #tpu.memory_space<vmem>>, vector<1x16x128xf32>,
    %24 = tpu.iota {dimensions = array<i32: 0>} : vector<16x128xi32>
    %25 = tpu.iota {dimensions = array<i32: 1>} : vector<16x128xi32>
    %c16_i32 = arith.constant 16 : i32
    %26 = arith.muli %arg1, %c16_i32 : i32
    %c11_i32 = arith.constant 11 : i32
    %27 = arith.subi %c11_i32, %26 : i32
    %28 = vector.broadcast %27 : i32 to vector<16x128xi32>
    %29 = arith.cmpi slt, %24, %28 : vector<16x128xi32>
    %c40_i32 = arith.constant 40 : i32
    %30 = vector.broadcast %c40_i32 : i32 to vector<16x128xi32>
    %31 = arith.cmpi slt, %25, %30 : vector<16x128xi32>
    %32 = arith.andi %29, %31 : vector<16x128xi1>
    %cst_14 = arith.constant -1.000000e+30 : f32
    %33 = vector.broadcast %cst_14 : f32 to vector<16x128xf32>
    %34 = arith.select %32, %20, %33 : vector<16x128xi1>, vector<16x128xf32>
    %cst_15 = arith.constant dense<0xFF800000> : vector<128xf32>
    %35 = vector.multi_reduction <maximumf>, %34, %cst_15 [0] : vector<16x128xf32> to vector<128xf32>
    %36 = vector.shape_cast %35 : vector<128xf32> to vector<1x128xf32>
    %37 = vector.shape_cast %36 : vector<1x128xf32> to vector<1x128xf32>
    %38 = vector.broadcast %37 : vector<1x128xf32> to vector<8x128xf32>
    %c0_16 = arith.constant 0 : index
    %c0_17 = arith.constant 0 : index
    %c0_18 = arith.constant 0 : index
    %c0_19 = arith.constant 0 : index
    %39 = vector.load %arg6[%c0_16, %c0_17, %c0_18, %c0_19] : memref<1x1x8x128xf32, #tpu.memory_space<vmem>>, vector<1x1x8x128xf32>
    %40 = vector.shape_cast %39 : vector<1x1x8x128xf32> to vector<8x128xf32>
    %41 = vector.shape_cast %38 : vector<8x128xf32> to vector<1x1x8x128xf32>
    tpu.vector_store %arg6[%c0_16, %c0_17, %c0_18, %c0_19], %41 {strides = array<i32>} : memref<1x1x8x128xf32, #tpu.memory_space<vmem>>, vector<1x1x8x128xf32>,
    return
  }
  func.func @transform_0(%arg0: i32, %arg1: i32) -> (i32, i32, i32) {
    %c0_i32 = arith.constant 0 : i32
    %c0_i32_0 = arith.constant 0 : i32
    return %arg0, %arg1, %c0_i32 : i32, i32, i32
  }
  func.func @transform_1(%arg0: i32, %arg1: i32) -> (i32, i32) {
    %c0_i32 = arith.constant 0 : i32
    %c0_i32_0 = arith.constant 0 : i32
    %c0_i32_1 = arith.constant 0 : i32
    return %c0_i32, %c0_i32_0 : i32, i32
  }
  func.func @transform_2(%arg0: i32, %arg1: i32) -> (i32, i32) {
    %c0_i32 = arith.constant 0 : i32
    %c0_i32_0 = arith.constant 0 : i32
    %c0_i32_1 = arith.constant 0 : i32
    return %c0_i32, %c0_i32_0 : i32, i32
  }
  func.func @transform_3(%arg0: i32, %arg1: i32) -> (i32, i32, i32) {
    %c0_i32 = arith.constant 0 : i32
    %c0_i32_0 = arith.constant 0 : i32
    return %arg0, %arg1, %c0_i32 : i32, i32, i32
  }
  func.func @transform_4(%arg0: i32, %arg1: i32) -> (i32, i32, i32, i32) {
    %c0_i32 = arith.constant 0 : i32
    %c0_i32_0 = arith.constant 0 : i32
    %c0_i32_1 = arith.constant 0 : i32
    return %arg0, %arg1, %c0_i32, %c0_i32_0 : i32, i32, i32, i32
  }
}

</mosaic_0001>

<bundles_post_ra>
// kernel: fbank.1
= control target key start
LH: loop header
LB: loop body
LE: loop exit
PB: predicated region body
PF: predicated region fallthrough
CT: control target
= control target key end

     0   :  { %10 = vsyncpa [#allocation3], 0  ;;  %s2060_s15 = smov 0   ;;  %s2062_s16 = smov 0   ;;  %s2195_s0 = inlined_call_operand.vmem [shape: bf16[2,16,480], index: 0, kind: input, shape index: {}]   ;;  %s2196_s1 = inlined_call_operand.hbm [shape: bf16[480,512], index: 1, kind: input, shape index: {}]   ;;  %s2197_s2 = inlined_call_operand.vmem [shape: bf16[256,128], index: 2, kind: input, shape index: {}]   ;;  %s2198_s3 = inlined_call_operand.vmem [shape: f32[2,16,128], index: 3, kind: output, shape index: {0}]   ;;  %s2199_s4 = inlined_call_operand.vmem [shape: f32[2,1,8,128], index: 4, kind: output, shape index: {1}]  }
   0x1   :  { %s2064_s17 = smov 0  }
   0x2 LB: > { %s1555_s18 = sadd.s32 4294967295, %s2030_s17   ;;  %s28_s19 = sadd.s32 1, %s2026_s16  ;;  %s2030_s17 = sphi %s2064_s17, %s16_s17   ;;  %s2026_s16 = sphi %s2062_s16, %s2203_s16   ;;  %s2022_s15 = sphi %s2060_s15, %s2202_s15  }
   0x3   : > { %p30_p0 = scmp.ge.s32.totalorder %s28_s19, 2  ;;  %p1557_p1 = scmp.ge.s32.totalorder %s2030_s17, 1 }
   0x4   : > { %p159_p2 = scmp.lt.s32.totalorder %s2030_s17, 3  ;;  %p2085_p4 = scmp.eq.s32.totalorder %s1555_s18, 0 }
   0x5   : > { %s2205_s19 = smov (%p30_p0, %s28_s19), 0  ;;  %s2032_s22 = smov [#allocation2]  }
   0x6   : > { %p2081_p3 = pnand %p1557_p1, %p159_p2  ;;  %s171_s23 = sshll.u32 %s2032_s22, 4  ;;  %s172_s23 = int_to_ptr.vmem [resolvable:$true] %s171_s23 }
   0x7   : > { %s1989_s24 = scalar_lea.vmem %s172_s23, 15360  ;;  %p1997_p11 = scmp.lt.s32.totalorder %s172_s23, %s172_s23 }
   0x8   : > { %p1739_p5 = pneg %p2081_p3  ;;  %p1990_p8 = scmp.ne.s32.totalorder %s172_s23, %s1989_s24 }
   0x9   : > { %p1998_p12 = scmp.lt.s32.totalorder %s1989_s24, %s1989_s24 }
   0xa   : > { %p1740_p6 = pnand %p2085_p4, %p1739_p5 }
   0xb   : > { %p1999_p13 = por %p1998_p12, %p1997_p11 }
   0xc   : > { %p1980_p7 = pneg %p1740_p6 }
   0xe   : > { %p1992_p9 = pnand %p1990_p8, %p1980_p7 }
  0x10   : > { %p1993_p10 = pneg %p1992_p9 }
  0x12   : > { %p2000_p0 = pnand %p1999_p13, %p1993_p10 }
  0x14   : > { %2003 = shalt.err (!%p2000_p0)
}
  0x15   : > { %s2033_s25 = smov 256   ;;  %s2034_s26 = smov 16  }
  0x16   : > { %1742 = dma.hbm_to_vmem [thread:$0]  (!%p1740_p6), %s2196_s1, 15360, %s172_s23, [#allocation3], %s2033_s25, %s2033_s25, %s2034_s26  }
  0x17   : > { %204 = sbr.rel (%p2081_p3) target bundleno = 598 (0x256), region = 32 }
  0x1c   : > { %2017 = dma.done.wait (%p2085_p4), [#allocation3], 15360  }
  0x1d   : > { %2019 = vsyncadd (%p2085_p4), [#allocation3], 4294951936  ;;  %v1772_v0 = vld [vmem:[#allocation2 + $0xe4] ss:$16 sps:$4 sm:$0xff]   ;;  %v1776_v2 = vld [vmem:[#allocation2 + $0xe0] ss:$16 sps:$4 sm:$0xff]  }
  0x1e   : > { %v1774_v1 = vld [vmem:[#allocation2 + $0x2e4] ss:$16 sps:$4 sm:$0xff]   ;;  %1022 = vmatprep.subr.bf16.mxu0 %v1772_v0  ;;  %v1777_v3 = vld [vmem:[#allocation2 + $0x2e0] ss:$16 sps:$4 sm:$0xff]   ;;  %p247_p1 = scmp.lt.s32.totalorder %s2022_s15, 1  ;;  %vm1018_vm0 = vcmask 785408  }
  0x1f   : > { %1065 = vmatprep.subr.bf16.mxu1 %v1774_v1  ;;  %v1778_v4 = vld [vmem:[#allocation2 + $0xc4] ss:$16 sps:$4 sm:$0xff]   ;;  %1023 = vmatpush1.bf16.msra.mxu0 %v1776_v2  ;;  %v1782_v6 = vld [vmem:[#allocation2 + $0xc0] ss:$16 sps:$4 sm:$0xff]   ;;  %v1863_v59 = vld [vmem:[#allocation2 + $0xec] ss:$16 sps:$4 sm:$0xff]  }
  0x20   : > { %1066 = vmatpush1.bf16.msra.mxu1 %v1777_v3  ;;  %v1780_v5 = vld [vmem:[#allocation2 + $0x2c4] ss:$16 sps:$4 sm:$0xff]   ;;  %1024 = vmatprep.subr.bf16.mxu0 %v1778_v4  ;;  %v1783_v7 = vld [vmem:[#allocation2 + $0x2c0] ss:$16 sps:$4 sm:$0xff]   ;;  %s2207_s15 = smov (!%p247_p1, %s2022_s15), 1 }
  0x21   : > { %1067 = vmatprep.subr.bf16.mxu1 %v1780_v5  ;;  %v1784_v8 = vld [vmem:[#allocation2 + $0xa4] ss:$16 sps:$4 sm:$0xff]   ;;  %v1788_v10 = vld [vmem:[#allocation2 + $0xa0] ss:$16 sps:$4 sm:$0xff]   ;;  %s1711_s29 = sshll.u32 %s2207_s15, 5  ;;  %s1712_s21 = sshll.u32 %s2207_s15, 4 }
  0x22   : > { %v1786_v9 = vld [vmem:[#allocation2 + $0x2a4] ss:$16 sps:$4 sm:$0xff]   ;;  %v1789_v11 = vld [vmem:[#allocation2 + $0x2a0] ss:$16 sps:$4 sm:$0xff]   ;;  %s2110_s6 = scalar_lea.vmem %s2195_s0, %s1711_s29  ;;  %v1861_v61 = vld [vmem:[#allocation2 + $0xe8] ss:$16 sps:$4 sm:$0xff]   ;;  %s265_s24 = scalar_lea.vmem %s2198_s3, %s1712_s21 }
  0x23   : > { %1025 = vmatpush1.bf16.msra.mxu0 %v1782_v6  ;;  %v1790_v12 = vld [vmem:[#allocation2 + $0x84] ss:$16 sps:$4 sm:$0xff]   ;;  %v1794_v14 = vld [vmem:[#allocation2 + $0x80] ss:$16 sps:$4 sm:$0xff]   ;;  %v2113_v42 = vld [vmem:[%s2110_s6 + $0xc] ss:$16 sps:$4 sm:$0xff]  }
  0x24   : > { %1068 = vmatpush1.bf16.msra.mxu1 %v1783_v7  ;;  %1026 = vmatprep.subr.bf16.mxu0 %v1784_v8  ;;  %v1792_v13 = vld [vmem:[#allocation2 + $0x284] ss:$16 sps:$4 sm:$0xff]   ;;  %v1795_v15 = vld [vmem:[#allocation2 + $0x280] ss:$16 sps:$4 sm:$0xff]   ;;  %v2119_v60 = vld [vmem:[%s2110_s6 + $0x8] ss:$16 sps:$4 sm:$0xff]  }
  0x25   : > { %1069 = vmatprep.subr.bf16.mxu1 %v1786_v9  ;;  %v1796_v16 = vld [vmem:[#allocation2 + $0x64] ss:$16 sps:$4 sm:$0xff]   ;;  %v1800_v18 = vld [vmem:[#allocation2 + $0x60] ss:$16 sps:$4 sm:$0xff]   ;;  %1691 = vmatprep.mubr.msk.bf16.mxu1 %vm1018_vm0, %v2113_v42  ;;  %v1869_v0 = vld [vmem:[#allocation2 + $0xcc] ss:$16 sps:$4 sm:$0xff]  }
  0x26   : > { %v1798_v17 = vld [vmem:[#allocation2 + $0x264] ss:$16 sps:$4 sm:$0xff]   ;;  %v1801_v19 = vld [vmem:[#allocation2 + $0x260] ss:$16 sps:$4 sm:$0xff]   ;;  %v1867_v1 = vld [vmem:[#allocation2 + $0xc8] ss:$16 sps:$4 sm:$0xff]  }
  0x27   : > { %1027 = vmatpush1.bf16.msra.mxu0 %v1788_v10  ;;  %v1802_v20 = vld [vmem:[#allocation2 + $0x44] ss:$16 sps:$4 sm:$0xff]   ;;  %v1806_v22 = vld [vmem:[#allocation2 + $0x40] ss:$16 sps:$4 sm:$0xff]   ;;  %v1876_v3 = vld [vmem:[#allocation2 + $0xac] ss:$16 sps:$4 sm:$0xff]  }
  0x28   : > { %1070 = vmatpush1.bf16.msra.mxu1 %v1789_v11  ;;  %1028 = vmatprep.subr.bf16.mxu0 %v1790_v12  ;;  %v1804_v21 = vld [vmem:[#allocation2 + $0x244] ss:$16 sps:$4 sm:$0xff]   ;;  %v1807_v23 = vld [vmem:[#allocation2 + $0x240] ss:$16 sps:$4 sm:$0xff]   ;;  %v1879_v4 = vld [vmem:[#allocation2 + $0x2ec] ss:$16 sps:$4 sm:$0xff]  }
  0x29   : > { %1071 = vmatprep.subr.bf16.mxu1 %v1792_v13  ;;  %v1808_v24 = vld [vmem:[#allocation2 + $0x24] ss:$16 sps:$4 sm:$0xff]   ;;  %v1812_v26 = vld [vmem:[#allocation2 + $0x20] ss:$16 sps:$4 sm:$0xff]   ;;  %v1874_v6 = vld [vmem:[#allocation2 + $0xa8] ss:$16 sps:$4 sm:$0xff]  }
  0x2a   : > { %v1810_v25 = vld [vmem:[#allocation2 + $0x224] ss:$16 sps:$4 sm:$0xff]   ;;  %v1813_v27 = vld [vmem:[#allocation2 + $0x220] ss:$16 sps:$4 sm:$0xff]   ;;  %v1877_v7 = vld [vmem:[#allocation2 + $0x2e8] ss:$16 sps:$4 sm:$0xff]  }
  0x2b   : > { %1029 = vmatpush1.bf16.msra.mxu0 %v1794_v14  ;;  %v1814_v28 = vld [vmem:[#allocation2 + $0x4] ss:$16 sps:$4 sm:$0xff]   ;;  %v1818_v30 = vld [vmem:[#allocation2] ss:$16 sps:$4 sm:$0xff]   ;;  %v1882_v8 = vld [vmem:[#allocation2 + $0x8c] ss:$16 sps:$4 sm:$0xff]  }
  0x2c   : > { %1072 = vmatpush1.bf16.msra.mxu1 %v1795_v15  ;;  %1030 = vmatprep.subr.bf16.mxu0 %v1796_v16  ;;  %v1816_v29 = vld [vmem:[#allocation2 + $0x204] ss:$16 sps:$4 sm:$0xff]   ;;  %v1819_v31 = vld [vmem:[#allocation2 + $0x200] ss:$16 sps:$4 sm:$0xff]   ;;  %v1885_v9 = vld [vmem:[#allocation2 + $0x2cc] ss:$16 sps:$4 sm:$0xff]  }
  0x2d   : > { %1073 = vmatprep.subr.bf16.mxu1 %v1798_v17  ;;  %v1820_v32 = vld [vmem:[#allocation2 + $0x1e4] ss:$16 sps:$4 sm:$0xff]   ;;  %v1824_v34 = vld [vmem:[#allocation2 + $0x1e0] ss:$16 sps:$4 sm:$0xff]   ;;  %v1880_v10 = vld [vmem:[#allocation2 + $0x88] ss:$16 sps:$4 sm:$0xff]  }
  0x2e   : > { %v1822_v33 = vld [vmem:[#allocation2 + $0x3a4] ss:$16 sps:$4 sm:$0xff]   ;;  %v1825_v35 = vld [vmem:[#allocation2 + $0x3a0] ss:$16 sps:$4 sm:$0xff]   ;;  %v1883_v11 = vld [vmem:[#allocation2 + $0x2c8] ss:$16 sps:$4 sm:$0xff]  }
  0x2f   : > { %1031 = vmatpush1.bf16.msra.mxu0 %v1800_v18  ;;  %v1826_v36 = vld [vmem:[#allocation2 + $0x1c4] ss:$16 sps:$4 sm:$0xff]   ;;  %v1830_v38 = vld [vmem:[#allocation2 + $0x1c0] ss:$16 sps:$4 sm:$0xff]   ;;  %v1888_v12 = vld [vmem:[#allocation2 + $0x6c] ss:$16 sps:$4 sm:$0xff]  }
  0x30   : > { %1074 = vmatpush1.bf16.msra.mxu1 %v1801_v19  ;;  %1032 = vmatprep.subr.bf16.mxu0 %v1802_v20  ;;  %v1828_v37 = vld [vmem:[#allocation2 + $0x384] ss:$16 sps:$4 sm:$0xff]   ;;  %v1831_v39 = vld [vmem:[#allocation2 + $0x380] ss:$16 sps:$4 sm:$0xff]   ;;  %v1891_v13 = vld [vmem:[#allocation2 + $0x2ac] ss:$16 sps:$4 sm:$0xff]  }
  0x31   : > { %1075 = vmatprep.subr.bf16.mxu1 %v1804_v21  ;;  %v1832_v40 = vld [vmem:[#allocation2 + $0x1a4] ss:$16 sps:$4 sm:$0xff]   ;;  %v1836_v43 = vld [vmem:[#allocation2 + $0x1a0] ss:$16 sps:$4 sm:$0xff]   ;;  %v1886_v14 = vld [vmem:[#allocation2 + $0x68] ss:$16 sps:$4 sm:$0xff]  }
  0x32   : > { %v1834_v41 = vld [vmem:[#allocation2 + $0x364] ss:$16 sps:$4 sm:$0xff]   ;;  %v1837_v44 = vld [vmem:[#allocation2 + $0x360] ss:$16 sps:$4 sm:$0xff]   ;;  %v1889_v15 = vld [vmem:[#allocation2 + $0x2a8] ss:$16 sps:$4 sm:$0xff]  }
  0x33   : > { %1033 = vmatpush1.bf16.msra.mxu0 %v1806_v22  ;;  %v1838_v45 = vld [vmem:[#allocation2 + $0x184] ss:$16 sps:$4 sm:$0xff]   ;;  %v1842_v47 = vld [vmem:[#allocation2 + $0x180] ss:$16 sps:$4 sm:$0xff]   ;;  %v1894_v16 = vld [vmem:[#allocation2 + $0x4c] ss:$16 sps:$4 sm:$0xff]  }
  0x34   : > { %1076 = vmatpush1.bf16.msra.mxu1 %v1807_v23  ;;  %1034 = vmatprep.subr.bf16.mxu0 %v1808_v24  ;;  %v1840_v46 = vld [vmem:[#allocation2 + $0x344] ss:$16 sps:$4 sm:$0xff]   ;;  %v1843_v48 = vld [vmem:[#allocation2 + $0x340] ss:$16 sps:$4 sm:$0xff]   ;;  %v1897_v17 = vld [vmem:[#allocation2 + $0x28c] ss:$16 sps:$4 sm:$0xff]  }
  0x35   : > { %1077 = vmatprep.subr.bf16.mxu1 %v1810_v25  ;;  %v1844_v49 = vld [vmem:[#allocation2 + $0x164] ss:$16 sps:$4 sm:$0xff]   ;;  %v1848_v52 = vld [vmem:[#allocation2 + $0x160] ss:$16 sps:$4 sm:$0xff]   ;;  %v1892_v18 = vld [vmem:[#allocation2 + $0x48] ss:$16 sps:$4 sm:$0xff]  }
  0x36   : > { %v1846_v50 = vld [vmem:[#allocation2 + $0x324] ss:$16 sps:$4 sm:$0xff]   ;;  %v1849_v53 = vld [vmem:[#allocation2 + $0x320] ss:$16 sps:$4 sm:$0xff]   ;;  %v1895_v19 = vld [vmem:[#allocation2 + $0x288] ss:$16 sps:$4 sm:$0xff]  }
  0x37   : > { %1035 = vmatpush1.bf16.msra.mxu0 %v1812_v26  ;;  %v1873_v51 = vld [vmem:[%s2110_s6 + $0x4] ss:$16 sps:$4 sm:$0xff]   ;;  %v1854_v56 = vld [vmem:[#allocation2 + $0x140] ss:$16 sps:$4 sm:$0xff]   ;;  %v1900_v20 = vld [vmem:[#allocation2 + $0x2c] ss:$16 sps:$4 sm:$0xff]  }
  0x38   : > { %1078 = vmatpush1.bf16.msra.mxu1 %v1813_v27  ;;  %1036 = vmatprep.subr.bf16.mxu0 %v1814_v28  ;;  %v1850_v54 = vld [vmem:[#allocation2 + $0x144] ss:$16 sps:$4 sm:$0xff]   ;;  %v1855_v57 = vld [vmem:[#allocation2 + $0x300] ss:$16 sps:$4 sm:$0xff]   ;;  %v1903_v21 = vld [vmem:[#allocation2 + $0x26c] ss:$16 sps:$4 sm:$0xff]  }
  0x39   : > { %1079 = vmatprep.subr.bf16.mxu1 %v1816_v29  ;;  %1054 = vmatprep.mubr.bf16.mxu0 %v1873_v51  ;;  %v1852_v55 = vld [vmem:[#allocation2 + $0x304] ss:$16 sps:$4 sm:$0xff]   ;;  %v1864_v62 = vld [vmem:[#allocation2 + $0x120] ss:$16 sps:$4 sm:$0xff]   ;;  %v1898_v22 = vld [vmem:[#allocation2 + $0x28] ss:$16 sps:$4 sm:$0xff]  }
  0x3a   : > { %v1859_v58 = vld [vmem:[#allocation2 + $0x124] ss:$16 sps:$4 sm:$0xff]   ;;  %v1870_v2 = vld [vmem:[#allocation2 + $0x100] ss:$16 sps:$4 sm:$0xff]   ;;  %v1901_v23 = vld [vmem:[#allocation2 + $0x268] ss:$16 sps:$4 sm:$0xff]  }
  0x3b   : > { %1037 = vmatpush1.bf16.msra.mxu0 %v1818_v30  ;;  %v1865_v63 = vld [vmem:[#allocation2 + $0x104] ss:$16 sps:$4 sm:$0xff]   ;;  %v2123_v5 = vld [vmem:[%s2110_s6] ss:$16 sps:$4 sm:$0xff]   ;;  %v1906_v24 = vld [vmem:[#allocation2 + $0xc] ss:$16 sps:$4 sm:$0xff]  }
  0x3c   : > { %1080 = vmatpush1.bf16.msra.mxu1 %v1819_v31  ;;  %1038 = vmatprep.subr.bf16.mxu0 %v1820_v32  ;;  %v1909_v25 = vld [vmem:[#allocation2 + $0x24c] ss:$16 sps:$4 sm:$0xff]   ;;  %v1904_v26 = vld [vmem:[#allocation2 + $0x8] ss:$16 sps:$4 sm:$0xff]   ;;  %s1566_s25 = sshll.u32 %s2207_s15, 3 }
  0x3d   : > { %1085 = vmatprep.subr.bf16.mxu1 %v1822_v33  ;;  %v1907_v27 = vld [vmem:[#allocation2 + $0x248] ss:$16 sps:$4 sm:$0xff]   ;;  %v1912_v28 = vld [vmem:[#allocation2 + $0x1ec] ss:$16 sps:$4 sm:$0xff]   ;;  %s273_s28 = scalar_lea.vmem %s2199_s4, %s1566_s25 }
  0x3e   : > { %v1915_v29 = vld [vmem:[#allocation2 + $0x22c] ss:$16 sps:$4 sm:$0xff]   ;;  %v1910_v30 = vld [vmem:[#allocation2 + $0x1e8] ss:$16 sps:$4 sm:$0xff]  }
  0x3f   : > { %1039 = vmatpush2.bf16.msra.mxu0 %v1824_v34  ;;  %v1913_v31 = vld [vmem:[#allocation2 + $0x228] ss:$16 sps:$4 sm:$0xff]   ;;  %v1918_v32 = vld [vmem:[#allocation2 + $0x1cc] ss:$16 sps:$4 sm:$0xff]  }
  0x40   : > { %1086 = vmatpush2.bf16.msra.mxu1 %v1825_v35  ;;  %1040 = vmatprep.subr.bf16.mxu0 %v1826_v36  ;;  %v1921_v33 = vld [vmem:[#allocation2 + $0x20c] ss:$16 sps:$4 sm:$0xff]   ;;  %v1916_v34 = vld [vmem:[#allocation2 + $0x1c8] ss:$16 sps:$4 sm:$0xff]  }
  0x41   : > { %1087 = vmatprep.subr.bf16.mxu1 %v1828_v37  ;;  %v1919_v35 = vld [vmem:[#allocation2 + $0x208] ss:$16 sps:$4 sm:$0xff]   ;;  %v1924_v36 = vld [vmem:[#allocation2 + $0x1ac] ss:$16 sps:$4 sm:$0xff]  }
  0x42   : > { %v1927_v37 = vld [vmem:[#allocation2 + $0x3ac] ss:$16 sps:$4 sm:$0xff]  }
  0x43   : > { %1041 = vmatpush2.bf16.msra.mxu0 %v1830_v38  ;;  %v1922_v38 = vld [vmem:[#allocation2 + $0x1a8] ss:$16 sps:$4 sm:$0xff]  }
  0x44   : > { %1088 = vmatpush2.bf16.msra.mxu1 %v1831_v39  ;;  %1042 = vmatprep.subr.bf16.mxu0 %v1832_v40  ;;  %v1925_v39 = vld [vmem:[#allocation2 + $0x3a8] ss:$16 sps:$4 sm:$0xff]   ;;  %v1930_v40 = vld [vmem:[#allocation2 + $0x18c] ss:$16 sps:$4 sm:$0xff]  }
  0x45   : > { %1089 = vmatprep.subr.bf16.mxu1 %v1834_v41  ;;  %v1933_v41 = vld [vmem:[#allocation2 + $0x38c] ss:$16 sps:$4 sm:$0xff]  }
  0x47   : > { %1043 = vmatpush2.bf16.msra.mxu0 %v1836_v43  ;;  %v1931_v43 = vld [vmem:[#allocation2 + $0x388] ss:$16 sps:$4 sm:$0xff]  }
  0x48   : > { %1090 = vmatpush2.bf16.msra.mxu1 %v1837_v44  ;;  %1044 = vmatprep.subr.bf16.mxu0 %v1838_v45  ;;  %v1936_v44 = vld [vmem:[#allocation2 + $0x16c] ss:$16 sps:$4 sm:$0xff]  }
  0x49   : > { %1091 = vmatprep.subr.bf16.mxu1 %v1840_v46  ;;  %v1939_v45 = vld [vmem:[#allocation2 + $0x36c] ss:$16 sps:$4 sm:$0xff]   ;;  %v1934_v46 = vld [vmem:[#allocation2 + $0x168] ss:$16 sps:$4 sm:$0xff]  }
  0x4b   : > { %1045 = vmatpush2.bf16.msra.mxu0 %v1842_v47  ;;  %v1937_v47 = vld [vmem:[#allocation2 + $0x368] ss:$16 sps:$4 sm:$0xff]  }
  0x4c   : > { %1092 = vmatpush2.bf16.msra.mxu1 %v1843_v48  ;;  %1046 = vmatprep.subr.bf16.mxu0 %v1844_v49  ;;  %v1942_v48 = vld [vmem:[#allocation2 + $0x14c] ss:$16 sps:$4 sm:$0xff]  }
  0x4d   : > { %1093 = vmatprep.subr.bf16.mxu1 %v1846_v50  ;;  %v1945_v49 = vld [vmem:[#allocation2 + $0x34c] ss:$16 sps:$4 sm:$0xff]   ;;  %v1940_v50 = vld [vmem:[#allocation2 + $0x148] ss:$16 sps:$4 sm:$0xff]  }
  0x4f   : > { %1047 = vmatpush2.bf16.msra.mxu0 %v1848_v52  ;;  %v1948_v52 = vld [vmem:[#allocation2 + $0x12c] ss:$16 sps:$4 sm:$0xff]  }
  0x50   : > { %1094 = vmatpush2.bf16.msra.mxu1 %v1849_v53  ;;  %1048 = vmatprep.subr.bf16.mxu0 %v1850_v54  ;;  %v1951_v53 = vld [vmem:[#allocation2 + $0x32c] ss:$16 sps:$4 sm:$0xff]   ;;  %v1946_v54 = vld [vmem:[#allocation2 + $0x128] ss:$16 sps:$4 sm:$0xff]  }
  0x51   : > { %1095 = vmatprep.subr.bf16.mxu1 %v1852_v55  ;;  %v1949_v55 = vld [vmem:[#allocation2 + $0x328] ss:$16 sps:$4 sm:$0xff]  }
  0x53   : > { %1049 = vmatpush2.bf16.msra.mxu0 %v1854_v56  ;;  %v1954_v56 = vld [vmem:[#allocation2 + $0x10c] ss:$16 sps:$4 sm:$0xff]  }
  0x54   : > { %1096 = vmatpush2.bf16.msra.mxu1 %v1855_v57  ;;  %1050 = vmatprep.subr.bf16.mxu0 %v1859_v58  ;;  %v1957_v57 = vld [vmem:[#allocation2 + $0x30c] ss:$16 sps:$4 sm:$0xff]   ;;  %v1952_v58 = vld [vmem:[#allocation2 + $0x108] ss:$16 sps:$4 sm:$0xff]  }
  0x55   : > { %1108 = vmatprep.subr.bf16.mxu1 %v1863_v59  ;;  %v1955_v59 = vld [vmem:[#allocation2 + $0x308] ss:$16 sps:$4 sm:$0xff]  }
  0x57   : > { %1098 = vmatmul.mubr.bf16.vlgmr.msra.gmra.mxu1 %v2119_v60  ;;  %1051 = vmatpush2.bf16.msra.mxu0 %v1864_v62  ;;  %v1959_v62 = vld [vmem:[%s2197_s2 + $0x38] sm:$0xff]  }
  0x58   : > { %1109 = vmatpush1.bf16.msra.mxu1 %v1861_v61  ;;  %1052 = vmatprep.subr.bf16.mxu0 %v1865_v63  ;;  %v1958_v61 = vld [vmem:[%s2197_s2 + $0x78] sm:$0xff]   ;;  %v1960_v63 = vld [vmem:[%s2197_s2 + $0x70] sm:$0xff]  }
  0x59   : > { %1110 = vmatprep.subr.bf16.mxu1 %v1869_v0  ;;  %1140 = vmatprep.mubr.bf16.mxu1 %v1873_v51  ;;  %v1943_v51 = vld [vmem:[#allocation2 + $0x348] ss:$16 sps:$4 sm:$0xff]   ;;  %v1961_v0 = vld [vmem:[%s2197_s2 + $0x30] sm:$0xff]  }
  0x5b   : > { %1053 = vmatpush2.bf16.msra.mxu0 %v1870_v2  ;;  %v1964_v2 = vld [vmem:[%s2197_s2 + $0x60] sm:$0xff]  }
  0x5c   : > { %1111 = vmatpush1.bf16.msra.mxu1 %v1867_v1  ;;  %1151 = vmatprep.subr.bf16.mxu0 %v1879_v4  ;;  %v1963_v1 = vld [vmem:[%s2197_s2 + $0x28] sm:$0xff]   ;;  %v1966_v4 = vld [vmem:[%s2197_s2 + $0x58] sm:$0xff]  }
  0x5d   : > { %1112 = vmatprep.subr.bf16.mxu1 %v1876_v3  ;;  %v1965_v3 = vld [vmem:[%s2197_s2 + $0x20] sm:$0xff]  }
  0x5e   : > { %1055 = vmatmul.mubr.bf16.vlgmr.msra.gmra.mxu0 %v2123_v5 }
  0x5f   : > { %1152 = vmatpush1.bf16.msra.mxu0 %v1877_v7  ;;  %1692 = vmatprep.mubr.msk.bf16.mxu0 %vm1018_vm0, %v2113_v42  ;;  %v1928_v42 = vld [vmem:[#allocation2 + $0x188] ss:$16 sps:$4 sm:$0xff]   ;;  %v1969_v7 = vld [vmem:[%s2197_s2 + $0x10] sm:$0xff]  }
  0x60   : > { %1113 = vmatpush1.bf16.msra.mxu1 %v1874_v6  ;;  %1153 = vmatprep.subr.bf16.mxu0 %v1885_v9  ;;  %v1968_v6 = vld [vmem:[%s2197_s2 + $0x50] sm:$0xff]   ;;  %v1971_v9 = vld [vmem:[%s2197_s2 + $0x8] sm:$0xff]  }
  0x61   : > { %1114 = vmatprep.subr.bf16.mxu1 %v1882_v8  ;;  %v1970_v8 = vld [vmem:[%s2197_s2 + $0x48] sm:$0xff]  }
  0x63   : > { %1154 = vmatpush1.bf16.msra.mxu0 %v1883_v11  ;;  %v1973_v11 = vld [vmem:[%s2197_s2] sm:$0xff]  }
  0x64   : > { %1115 = vmatpush1.bf16.msra.mxu1 %v1880_v10  ;;  %1155 = vmatprep.subr.bf16.mxu0 %v1891_v13  ;;  %v1972_v10 = vld [vmem:[%s2197_s2 + $0x40] sm:$0xff]  }
  0x65   : > { %1116 = vmatprep.subr.bf16.mxu1 %v1888_v12 }
  0x67   : > { %1156 = vmatpush1.bf16.msra.mxu0 %v1889_v15 }
  0x68   : > { %1117 = vmatpush1.bf16.msra.mxu1 %v1886_v14  ;;  %1157 = vmatprep.subr.bf16.mxu0 %v1897_v17 }
  0x69   : > { %1118 = vmatprep.subr.bf16.mxu1 %v1894_v16 }
  0x6b   : > { %1158 = vmatpush1.bf16.msra.mxu0 %v1895_v19 }
  0x6c   : > { %1119 = vmatpush1.bf16.msra.mxu1 %v1892_v18  ;;  %1159 = vmatprep.subr.bf16.mxu0 %v1903_v21 }
  0x6d   : > { %1120 = vmatprep.subr.bf16.mxu1 %v1900_v20 }
  0x6f   : > { %1160 = vmatpush1.bf16.msra.mxu0 %v1901_v23 }
  0x70   : > { %1121 = vmatpush1.bf16.msra.mxu1 %v1898_v22  ;;  %1161 = vmatprep.subr.bf16.mxu0 %v1909_v25 }
  0x71   : > { %1122 = vmatprep.subr.bf16.mxu1 %v1906_v24 }
  0x73   : > { %1162 = vmatpush1.bf16.msra.mxu0 %v1907_v27 }
  0x74   : > { %1123 = vmatpush1.bf16.msra.mxu1 %v1904_v26  ;;  %1163 = vmatprep.subr.bf16.mxu0 %v1915_v29 }
  0x75   : > { %1124 = vmatprep.subr.bf16.mxu1 %v1912_v28 }
  0x77   : > { %1164 = vmatpush1.bf16.msra.mxu0 %v1913_v31 }
  0x78   : > { %1125 = vmatpush2.bf16.msra.mxu1 %v1910_v30  ;;  %1165 = vmatprep.subr.bf16.mxu0 %v1921_v33 }
  0x79   : > { %1126 = vmatprep.subr.bf16.mxu1 %v1918_v32 }
  0x7b   : > { %1166 = vmatpush1.bf16.msra.mxu0 %v1919_v35 }
  0x7c   : > { %1127 = vmatpush2.bf16.msra.mxu1 %v1916_v34  ;;  %1171 = vmatprep.subr.bf16.mxu0 %v1927_v37 }
  0x7d   : > { %1128 = vmatprep.subr.bf16.mxu1 %v1924_v36 }
  0x7f   : > { %1172 = vmatpush2.bf16.msra.mxu0 %v1925_v39 }
  0x80   : > { %1129 = vmatpush2.bf16.msra.mxu1 %v1922_v38  ;;  %1173 = vmatprep.subr.bf16.mxu0 %v1933_v41 }
  0x81   : > { %1130 = vmatprep.subr.bf16.mxu1 %v1930_v40 }
  0x83   : > { %1174 = vmatpush2.bf16.msra.mxu0 %v1931_v43 }
  0x84   : > { %1131 = vmatpush2.bf16.msra.mxu1 %v1928_v42  ;;  %1175 = vmatprep.subr.bf16.mxu0 %v1939_v45 }
  0x85   : > { %1132 = vmatprep.subr.bf16.mxu1 %v1936_v44 }
  0x87   : > { %1176 = vmatpush2.bf16.msra.mxu0 %v1937_v47 }
  0x88   : > { %1133 = vmatpush2.bf16.msra.mxu1 %v1934_v46  ;;  %1177 = vmatprep.subr.bf16.mxu0 %v1945_v49 }
  0x89   : > { %1134 = vmatprep.subr.bf16.mxu1 %v1942_v48 }
  0x8b   : > { %1178 = vmatpush2.bf16.msra.mxu0 %v1943_v51 }
  0x8c   : > { %1135 = vmatpush2.bf16.msra.mxu1 %v1940_v50  ;;  %1179 = vmatprep.subr.bf16.mxu0 %v1951_v53 }
  0x8d   : > { %1136 = vmatprep.subr.bf16.mxu1 %v1948_v52 }
  0x8f   : > { %1180 = vmatpush2.bf16.msra.mxu0 %v1949_v55 }
  0x90   : > { %1137 = vmatpush2.bf16.msra.mxu1 %v1946_v54  ;;  %1181 = vmatprep.subr.bf16.mxu0 %v1957_v57 }
  0x91   : > { %1138 = vmatprep.subr.bf16.mxu1 %v1954_v56 }
  0x93   : > { %1182 = vmatpush2.bf16.msra.mxu0 %v1955_v59 }
  0x94   : > { %1139 = vmatpush2.bf16.msra.mxu1 %v1952_v58  ;;  %1713 = vmatprep.subr.bf16.mxu0 %v1958_v61  ;;  %v1389_v58 = vlaneseq }
  0x96   : > { %1184 = vmatmul.mubr.bf16.vlgmr.msra.gmra.mxu0 %v2119_v60  ;;  %v1962_v60 = vld [vmem:[%s2197_s2 + $0x68] sm:$0xff]   ;;  %v1390_v59 = vshrl.u32 %v1389_v58, 7 }
  0x97   : > { %1141 = vmatmul.mubr.bf16.vlgmr.msra.gmra.mxu1 %v2123_v5  ;;  %1714 = vmatpush3.bf16.msra.mxu0 %v1959_v62  ;;  %v1967_v5 = vld [vmem:[%s2197_s2 + $0x18] sm:$0xff]  }
  0x98   : > { %1715 = vmatprep.subr.bf16.mxu0 %v1960_v63  ;;  %v1391_v63 = vadd.s32 8, %v1390_v59 }
  0x9a   : > { %vm1398_vm1 = vcmp.lt.s32.totalorder %v1391_v63, 11 }
  0x9b   : > { %1716 = vmatpush3.bf16.msra.mxu0 %v1961_v0 }
  0x9c   : > { %1717 = vmatprep.subr.bf16.mxu0 %v1962_v60  ;;  %v1393_v60 = vand.u32 127, %v1389_v58 }
  0x9e   : > { %vm1399_vm2 = vcmp.lt.s32.totalorder %v1393_v60, 40 }
  0x9f   : > { %1718 = vmatpush3.bf16.msra.mxu0 %v1963_v1  ;;  %vm1401_vm3 = vmand %vm1398_vm1, %vm1399_vm2 }
  0xa0   : > { %1719 = vmatprep.subr.bf16.mxu0 %v1964_v2 }
  0xa3   : > { %1720 = vmatpush3.bf16.msra.mxu0 %v1965_v3 }
  0xa4   : > { %1721 = vmatprep.subr.bf16.mxu0 %v1966_v4 }
  0xa7   : > { %1722 = vmatpush3.bf16.msra.mxu0 %v1967_v5 }
  0xa8   : > { %1723 = vmatprep.subr.bf16.mxu0 %v1968_v6 }
  0xab   : > { %1724 = vmatpush3.bf16.msra.mxu0 %v1969_v7 }
  0xac   : > { %1725 = vmatprep.subr.bf16.mxu0 %v1970_v8 }
  0xaf   : > { %1726 = vmatpush3.bf16.msra.mxu0 %v1971_v9 }
  0xb0   : > { %1727 = vmatprep.subr.bf16.mxu0 %v1972_v10 }
  0xb3   : > { %1728 = vmatpush3.bf16.msra.mxu0 %v1973_v11 }
 0x117   : > { %v1099_v12 = vpop.f32.mrf.mxu1 }
 0x119   : > { %v1101_v14 = vpop.f32.mrf.mxu1 }
 0x11b   : > { %v1103_v16 = vpop.f32.mrf.mxu1 }
 0x11d   : > { %v1105_v18 = vpop.f32.mrf.mxu1 }
 0x11e   : > { %v1056_v13 = vpop.f32.mrf.mxu0 }
 0x11f   : > { %v1100_v32 = vadd.f32 %v1099_v12, %v1056_v13 }
 0x120   : > { %v1058_v15 = vpop.f32.mrf.mxu0 }
 0x121   : > { %v1102_v29 = vadd.f32 %v1101_v14, %v1058_v15  ;;  %v1194_v43 = vmul.f32 %v1100_v32, %v1100_v32 }
 0x122   : > { %v1060_v17 = vpop.f32.mrf.mxu0 }
 0x123   : > { %v1104_v25 = vadd.f32 %v1103_v16, %v1060_v17  ;;  %v1195_v40 = vmul.f32 %v1102_v29, %v1102_v29 }
 0x124   : > { %v1062_v19 = vpop.f32.mrf.mxu0 }
 0x125   : > { %v1106_v30 = vadd.f32 %v1105_v18, %v1062_v19  ;;  %v1196_v38 = vmul.f32 %v1104_v25, %v1104_v25 }
 0x127   : > { %v1197_v41 = vmul.f32 %v1106_v30, %v1106_v30 }
 0x156   : > { %v1185_v21 = vpop.f32.mrf.mxu0 }
 0x157   : > { %v1142_v20 = vpop.f32.mrf.mxu1 }
 0x158   : > { %v1187_v23 = vpop.f32.mrf.mxu0  ;;  %v1186_v26 = vadd.f32 %v1185_v21, %v1142_v20 }
 0x159   : > { %v1144_v22 = vpop.f32.mrf.mxu1 }
 0x15a   : > { %v1188_v24 = vadd.f32 %v1187_v23, %v1144_v22  ;;  %v1189_v28 = vpop.f32.mrf.mxu0  ;;  %v1198_v39 = vmul.f32 %v1186_v26, %v1186_v26 }
 0x15b   : > { %v1146_v27 = vpop.f32.mrf.mxu1 }
 0x15c   : > { %v1190_v31 = vadd.f32 %v1189_v28, %v1146_v27  ;;  %v1191_v34 = vpop.f32.mrf.mxu0  ;;  %v1199_v35 = vmul.f32 %v1188_v24, %v1188_v24  ;;  %v1202_v47 = vadd.f32 %v1198_v39, %v1194_v43 }
 0x15d   : > { %v1148_v33 = vpop.f32.mrf.mxu1 }
 0x15e   : > { %v1200_v36 = vmul.f32 %v1190_v31, %v1190_v31  ;;  %v1192_v37 = vadd.f32 %v1191_v34, %v1148_v33  ;;  %v1203_v45 = vadd.f32 %v1199_v35, %v1195_v40 }
 0x160   : > { %v1201_v42 = vmul.f32 %v1192_v37, %v1192_v37  ;;  %v1204_v44 = vadd.f32 %v1200_v36, %v1196_v38 }
 0x162   : > { %v1205_v46 = vadd.f32 %v1201_v42, %v1197_v41  ;;  %v1206_v49 = vpack.c.bf16 %v1204_v44, %v1202_v47 }
 0x164   : > { %v1207_v48 = vpack.c.bf16 %v1205_v46, %v1203_v45 }
 0x166   : > { %1368 = vmatprep.mubr.bf16.mxu0 %v1207_v48 }
 0x167   : > { %1369 = vmatmul.mubr.bf16.vlgmr.msra.gmra.mxu0 %v1206_v49 }
 0x227   : > { %v1729_v50 = vpop.f32.mrf.mxu0 }
 0x229   : > { %v1730_v51 = vpop.f32.mrf.mxu0 }
 0x22a   : > { %v1731_v52 = vadd.f32 %v1730_v51, %v1729_v50 }
 0x22b   : > { %v1732_v53 = vpop.f32.mrf.mxu0 }
 0x22c   : > { %v1377_v54 = vmax.f32 %v1731_v52, 1e-10 }
 0x22d   : > { %v1733_v55 = vpop.f32.mrf.mxu0 }
 0x22e   : > { %1974 = vlog2.f32 %v1377_v54  ;;  %v1734_v56 = vadd.f32 %v1733_v55, %v1732_v53 }
 0x230   : > { %v1378_v57 = vmax.f32 %v1734_v56, 1e-10 }
 0x232   : > { %1976 = vlog2.f32 %v1378_v57 }
 0x23b   : > { %v1975_v61 = vpop.eup %1974 }
 0x23c   : > { %v1380_v62 = vmul.f32 0.6931472, %v1975_v61 }
 0x23e   : > { %v1383_v0 = vmul.f32 0.4342945, %v1380_v62 }
 0x23f   : > { %v1977_v1 = vpop.eup %1976 }
 0x240   : > { %v1385_v2 = vmul.f32 10.0, %v1383_v0  ;;  %v1382_v3 = vmul.f32 0.6931472, %v1977_v1 }
 0x242   : > { %1387 = vst [vmem:[%s265_s24] sm:$0xff] %v1385_v2  ;;  %v1384_v4 = vmul.f32 0.4342945, %v1382_v3  ;;  %v1402_v6 = vsel %vm1399_vm2, %v1385_v2, -1e+30 }
 0x244   : > { %v1386_v5 = vmul.f32 10.0, %v1384_v4 }
 0x246   : > { %1388 = vst [vmem:[%s265_s24 + $0x8] sm:$0xff] %v1386_v5  ;;  %v1403_v7 = vsel %vm1401_vm3, %v1386_v5, -1e+30 }
 0x247   : > { %v1404_v8 = vmax.f32 %v1402_v6, %v1403_v7 }
 0x249   : > { %v1405_v9 = vrot.slane %v1404_v8, 4 }
 0x24b   : > { %v1406_v10 = vmax.f32 %v1404_v8, %v1405_v9 }
 0x24d   : > { %v1407_v11 = vrot.slane %v1406_v10, 2 }
 0x24f   : > { %v1408_v12 = vmax.f32 %v1406_v10, %v1407_v11 }
 0x251   : > { %v1409_v13 = vrot.slane %v1408_v12, 1 }
 0x253   : > { %v1410_v14 = vmax.f32 %v1408_v12, %v1409_v13 }
 0x255   : > { %1411 = vst [vmem:[%s273_s28] sm:$0xff] %v1410_v14 }
 0x256 PF: > { %s16_s17 = sadd.s32 1, %s2030_s17   ;;  %s2202_s15 = smov %s2026_s16 }
 0x257   : > { %p13_p2 = scmp.ge.s32.totalorder %s16_s17, 4   ;;  %s2203_s16 = smov %s2205_s19 }
 0x259   :  { %15 = sbr.rel (!%p13_p2) target bundleno = 2 (0x2), region = 79 }
 0x25e   :  { %1462 = vsyncpa [#allocation3], 1 }
 0x25f   :  { %1464 = vsyncpa [#allocation3 + $0x1], 1 }

</bundles_post_ra>
